<compile_context>
chip_gen: v7x
topology: tpu7x:2x2x1
jax: 0.10.0
libtpu: 0.0.40
codegen_flags: <defaults>
</compile_context>

<pallas_src>
import functools

import jax
import jax.numpy as jnp
from jax.experimental import pallas as pl
from jax.experimental.pallas import tpu as pltpu

_LANE = 128


def _round_up(x, m):
    return ((x + m - 1) // m) * m


# ---------------------------------------------------------------------------
# Fused single-pass kernel: pool -> fc1 -> relu -> fc2 -> sigmoid -> scale.
# ---------------------------------------------------------------------------
def _fused_kernel(x_ref, w1t_ref, b1_ref, w2t_ref, b2_ref, o_ref, *, hw_inv):
    # x_ref/o_ref: (nb, C, HWp)  w1t: (C, Ch)  b1: (1, Ch)  w2t: (Ch, C)  b2: (1, C)
    # Global average pool over the flattened spatial axis.  dtype=f32 gives
    # f32 accumulation without materializing an f32 copy of the whole block.
    pooled = jnp.sum(x_ref[...], axis=-1, dtype=jnp.float32) * hw_inv        # (nb, C)

    h = jnp.dot(pooled.astype(w1t_ref.dtype), w1t_ref[...],
                preferred_element_type=jnp.float32) + b1_ref[...]
    h = jnp.maximum(h, 0.0)                                                  # (nb, Ch)

    logits = jnp.dot(h.astype(w2t_ref.dtype), w2t_ref[...],
                     preferred_element_type=jnp.float32) + b2_ref[...]
    atten = jax.nn.sigmoid(logits)                                           # (nb, C)

    # Scale in the input dtype (native bf16 VALU on v6e/v7x).  Re-reading the
    # ref keeps no long-lived full-block temporary alive.
    o_ref[...] = atten.astype(o_ref.dtype)[:, :, None] * x_ref[...]


# ---------------------------------------------------------------------------
# Two-pass fallback, pass 1: spatially tiled pooling + the tiny FC stack.
# ---------------------------------------------------------------------------
def _pool_fc_kernel(x_ref, w1t_ref, b1_ref, w2t_ref, b2_ref, atten_ref, acc_ref,
                    *, hw_inv):
    hw_idx = pl.program_id(1)

    @pl.when(hw_idx == 0)
    def _():
        acc_ref[...] = jnp.zeros_like(acc_ref)

    acc_ref[...] += jnp.sum(x_ref[...], axis=-1, dtype=jnp.float32)          # (nb, C)

    @pl.when(hw_idx == pl.num_programs(1) - 1)
    def _():
        pooled = acc_ref[...] * hw_inv                                       # (nb, C)
        h = jnp.dot(pooled.astype(w1t_ref.dtype), w1t_ref[...],
                    preferred_element_type=jnp.float32) + b1_ref[...]
        h = jnp.maximum(h, 0.0)
        logits = jnp.dot(h.astype(w2t_ref.dtype), w2t_ref[...],
                         preferred_element_type=jnp.float32) + b2_ref[...]
        atten_ref[...] = jax.nn.sigmoid(logits)[:, :, None]                  # (nb, C, 1)


# ---------------------------------------------------------------------------
# Two-pass fallback, pass 2: broadcast-scale the input tiles.
# ---------------------------------------------------------------------------
def _scale_kernel(atten_ref, x_ref, o_ref):
    # atten: (nb, C, 1) f32;  x/o: (nb, C, hw_tile) in input dtype.
    o_ref[...] = atten_ref[...].astype(o_ref.dtype) * x_ref[...]


def channel_attention(x, w1, b1, w2, b2, *, force_two_pass=False, hw_tile=None):
    """x: (N, C, H, W). w1: (C//4, C), b1: (C//4,), w2: (C, C//4), b2: (C,)."""
    N, C, H, W = x.shape
    Ch = w1.shape[0]
    assert w1.shape == (Ch, C) and w2.shape == (C, Ch)
    assert b1.shape == (Ch,) and b2.shape == (C,)
    # F.avg_pool2d(x, kernel_size=x.size()[-1]) only collapses spatially to
    # (1, 1) when H == W (the PyTorch module assumes square feature maps).
    assert H == W, "module pools with kernel_size = W, assumes H == W"

    HW = H * W
    itemsize = jnp.dtype(x.dtype).itemsize

    # bf16 inputs -> bf16 resident weights (halves MXU passes + weight VMEM);
    # accumulation stays f32 via preferred_element_type.
    w_dtype = jnp.bfloat16 if x.dtype == jnp.bfloat16 else jnp.float32
    w1t = jnp.asarray(w1, w_dtype).T                      # (C, Ch)
    w2t = jnp.asarray(w2, w_dtype).T                      # (Ch, C)
    b1_2d = jnp.asarray(b1, jnp.float32).reshape(1, Ch)
    b2_2d = jnp.asarray(b2, jnp.float32).reshape(1, C)
    weight_bytes = int((w1t.size + w2t.size) * jnp.dtype(w_dtype).itemsize
                       + (b1_2d.size + b2_2d.size) * 4)

    # VMEM limit: ~75% of physical so compiler scratch / weights / pipeline
    # buffers always have headroom (v7x has only 64 MiB per TensorCore).
    try:
        vmem_cap = int(pltpu.get_tpu_info().vmem_capacity_bytes)
    except Exception:
        vmem_cap = 64 * 1024 * 1024
    vmem_limit = max(32 * 1024 * 1024, min(vmem_cap * 3 // 4, 96 * 1024 * 1024))

    # Per-block target ~4 MiB: the measured HBM roofline saturates well below
    # this, and double-buffered in+out blocks stay around 16 MiB total.
    target_block_bytes = 4 * 1024 * 1024
    # Largest per-batch slab we allow through the fused path (double-buffered
    # in+out => 4x this must stay comfortably under the VMEM limit).
    fused_max_batch_bytes = 8 * 1024 * 1024

    hw_pad128 = _round_up(HW, _LANE)           # lane-dense (unmasked) stores
    bytes_per_batch = C * hw_pad128 * itemsize
    hw_inv = 1.0 / HW                          # true spatial size (pad is zeros)

    x3 = x.reshape(N, C, HW)                   # contiguous no-op view for NCHW

    # =======================================================================
    # Fast path: fused single pass, batch-tiled only.
    # =======================================================================
    if not force_two_pass and bytes_per_batch <= fused_max_batch_bytes:
        x3p = x3 if hw_pad128 == HW else jnp.pad(
            x3, ((0, 0), (0, 0), (0, hw_pad128 - HW)))

        nb = int(max(1, min(target_block_bytes // bytes_per_batch,
                            pl.cdiv(N, 4))))
        # Keep the grid step count even when possible: v7x's 2 TensorCores
        # share the "parallel" batch axis and an odd count idles one core.
        while nb > 1 and pl.cdiv(N, nb) % 2 == 1:
            nb -= 1
        grid = (pl.cdiv(N, nb),)

        cost = pl.CostEstimate(
            flops=int(2 * N * C * HW + 4 * N * C * Ch),
            transcendentals=int(N * C),
            bytes_accessed=int(2 * N * C * hw_pad128 * itemsize + weight_bytes))

        out3 = pl.pallas_call(
            functools.partial(_fused_kernel, hw_inv=hw_inv),
            out_shape=jax.ShapeDtypeStruct((N, C, hw_pad128), x.dtype),
            grid_spec=pltpu.PrefetchScalarGridSpec(
                num_scalar_prefetch=0,
                grid=grid,
                in_specs=[
                    pl.BlockSpec((nb, C, hw_pad128), lambda b: (b, 0, 0)),
                    pl.BlockSpec((C, Ch), lambda b: (0, 0)),   # constant maps:
                    pl.BlockSpec((1, Ch), lambda b: (0, 0)),   # weights/biases
                    pl.BlockSpec((Ch, C), lambda b: (0, 0)),   # stay resident,
                    pl.BlockSpec((1, C), lambda b: (0, 0)),    # no re-DMA
                ],
                out_specs=pl.BlockSpec((nb, C, hw_pad128), lambda b: (b, 0, 0)),
            ),
            compiler_params=pltpu.CompilerParams(
                dimension_semantics=("parallel",),
                vmem_limit_bytes=vmem_limit),
            cost_estimate=cost,
        )(x3p, w1t, b1_2d, w2t, b2_2d)

        if hw_pad128 != HW:
            out3 = out3[:, :, :HW]
        return out3.reshape(N, C, H, W)

    # =======================================================================
    # Fallback path: two passes, spatially tiled over HW (shape-robust for
    # large C*HW feature maps that cannot fit one per-batch slab in VMEM).
    # =======================================================================
    if hw_tile is None:
        n_hw = max(1, pl.cdiv(C * hw_pad128 * itemsize, target_block_bytes))
        hw_tile = _round_up(pl.cdiv(hw_pad128, n_hw), _LANE)
    hw_tile = int(hw_tile)
    assert hw_tile % _LANE == 0, "hw_tile must be a multiple of 128"
    hw_pad = _round_up(HW, hw_tile)
    n_hw = hw_pad // hw_tile
    nb = 1  # one batch row per block keeps x blocks near the target size

    x3p = x3 if hw_pad == HW else jnp.pad(
        x3, ((0, 0), (0, 0), (0, hw_pad - HW)))   # zero pad: exact sums

    # ---- pass 1: pooled sums (f32 scratch accumulator) + FC stack ---------
    atten = pl.pallas_call(
        functools.partial(_pool_fc_kernel, hw_inv=hw_inv),
        out_shape=jax.ShapeDtypeStruct((N, C, 1), jnp.float32),
        grid_spec=pltpu.PrefetchScalarGridSpec(
            num_scalar_prefetch=0,
            grid=(pl.cdiv(N, nb), n_hw),
            in_specs=[
                pl.BlockSpec((nb, C, hw_tile), lambda b, h: (b, 0, h)),
                pl.BlockSpec((C, Ch), lambda b, h: (0, 0)),
                pl.BlockSpec((1, Ch), lambda b, h: (0, 0)),
                pl.BlockSpec((Ch, C), lambda b, h: (0, 0)),
                pl.BlockSpec((1, C), lambda b, h: (0, 0)),
            ],
            out_specs=pl.BlockSpec((nb, C, 1), lambda b, h: (b, 0, 0)),
            scratch_shapes=[pltpu.VMEM((nb, C), jnp.float32)],
        ),
        compiler_params=pltpu.CompilerParams(
            dimension_semantics=("parallel", "arbitrary"),
            vmem_limit_bytes=vmem_limit),
        cost_estimate=pl.CostEstimate(
            flops=int(N * C * HW + 4 * N * C * Ch),
            transcendentals=int(N * C),
            bytes_accessed=int(N * C * hw_pad * itemsize + weight_bytes
                               + N * C * 4)),
    )(x3p, w1t, b1_2d, w2t, b2_2d)

    # ---- pass 2: broadcast-scale the input tiles ---------------------------
    out3 = pl.pallas_call(
        _scale_kernel,
        out_shape=jax.ShapeDtypeStruct((N, C, hw_pad), x.dtype),
        grid_spec=pltpu.PrefetchScalarGridSpec(
            num_scalar_prefetch=0,
            grid=(pl.cdiv(N, nb), n_hw),
            in_specs=[
                pl.BlockSpec((nb, C, 1), lambda b, h: (b, 0, 0)),
                pl.BlockSpec((nb, C, hw_tile), lambda b, h: (b, 0, h)),
            ],
            out_specs=pl.BlockSpec((nb, C, hw_tile), lambda b, h: (b, 0, h)),
        ),
        compiler_params=pltpu.CompilerParams(
            dimension_semantics=("parallel", "parallel"),
            vmem_limit_bytes=vmem_limit),
        cost_estimate=pl.CostEstimate(
            flops=int(N * C * HW),
            transcendentals=0,
            bytes_accessed=int(2 * N * C * hw_pad * itemsize + N * C * 4)),
    )(atten, x3p)

    if hw_pad != HW:
        out3 = out3[:, :, :HW]
    return out3.reshape(N, C, H, W)


def channel_attention_ref(x, w1, b1, w2, b2):
    """Pure-JAX reference matching the PyTorch forward."""
    pooled = jnp.mean(x, axis=(2, 3))                      # (N, C)
    h = jnp.maximum(pooled @ w1.T + b1, 0.0)               # (N, C//4)
    atten = jax.nn.sigmoid(h @ w2.T + b2)                  # (N, C)
    return atten[:, :, None, None] * x


if __name__ == "__main__":
    # Small shapes consistent with the module (C divisible by 4, H == W).
    N, C, H, W = 2, 16, 16, 16
    Ch = C // 4

    key = jax.random.PRNGKey(0)
    kx, k1, k2, k3, k4 = jax.random.split(key, 5)

    x = jax.random.normal(kx, (N, C, H, W), dtype=jnp.float32)

    # nn.Linear-style init: uniform(-1/sqrt(fan_in), 1/sqrt(fan_in)).
    bound1 = 1.0 / (C ** 0.5)
    w1 = jax.random.uniform(k1, (Ch, C), jnp.float32, -bound1, bound1)
    b1 = jax.random.uniform(k2, (Ch,), jnp.float32, -bound1, bound1)
    bound2 = 1.0 / (Ch ** 0.5)
    w2 = jax.random.uniform(k3, (C, Ch), jnp.float32, -bound2, bound2)
    b2 = jax.random.uniform(k4, (C,), jnp.float32, -bound2, bound2)

    ref = channel_attention_ref(x, w1, b1, w2, b2)

    # Fused fast path.
    out = jax.block_until_ready(channel_attention(x, w1, b1, w2, b2))
    assert out.shape == (N, C, H, W)
    assert jnp.allclose(out, ref, atol=1e-5, rtol=1e-5), "fused path mismatch"

    # Also exercise the spatially-tiled two-pass fallback on the same input.
    out2 = jax.block_until_ready(
        channel_attention(x, w1, b1, w2, b2, force_two_pass=True, hw_tile=128))
    assert jnp.allclose(out2, ref, atol=1e-5, rtol=1e-5), "two-pass mismatch"

    print("KERNEL_OK")
</pallas_src>

<mosaic_0001>
module attributes {stable_mosaic.version = 11 : i64} {
  func.func @_fused_kernel(%arg0: i32, %arg1: memref<1x16x256xf32, #tpu.memory_space<vmem>>, %arg2: memref<16x4xf32, #tpu.memory_space<vmem>>, %arg3: memref<1x4xf32, #tpu.memory_space<vmem>>, %arg4: memref<4x16xf32, #tpu.memory_space<vmem>>, %arg5: memref<1x16xf32, #tpu.memory_space<vmem>>, %arg6: memref<1x16x256xf32, #tpu.memory_space<vmem>>) attributes {dimension_semantics = [#tpu.dimension_semantics<parallel>], iteration_bounds = array<i64: 2>, scalar_prefetch = 0 : i64, scratch_operands = 0 : i64, tpu.core_type = #tpu.core_type<tc>, window_params = [{transform_indices = @transform_0, window_bounds = array<i64: 1, 16, 256>}, {pipeline_mode = #tpu.pipeline_mode<synchronous>, transform_indices = @transform_1, window_bounds = array<i64: 16, 4>}, {pipeline_mode = #tpu.pipeline_mode<synchronous>, transform_indices = @transform_2, window_bounds = array<i64: 1, 4>}, {pipeline_mode = #tpu.pipeline_mode<synchronous>, transform_indices = @transform_3, window_bounds = array<i64: 4, 16>}, {pipeline_mode = #tpu.pipeline_mode<synchronous>, transform_indices = @transform_4, window_bounds = array<i64: 1, 16>}, {transform_indices = @transform_5, window_bounds = array<i64: 1, 16, 256>}]} {
    %c0 = arith.constant 0 : index
    %c0_0 = arith.constant 0 : index
    %c0_1 = arith.constant 0 : index
    %0 = vector.load %arg1[%c0, %c0_0, %c0_1] : memref<1x16x256xf32, #tpu.memory_space<vmem>>, vector<1x16x256xf32>
    %cst = arith.constant dense<0.000000e+00> : vector<1x16xf32>
    %1 = vector.multi_reduction <add>, %0, %cst [2] : vector<1x16x256xf32> to vector<1x16xf32>
    %cst_2 = arith.constant 3.906250e-03 : f32
    %2 = vector.broadcast %cst_2 : f32 to vector<1x16xf32>
    %3 = arith.mulf %1, %2 : vector<1x16xf32>
    %c0_3 = arith.constant 0 : index
    %c0_4 = arith.constant 0 : index
    %4 = vector.load %arg2[%c0_3, %c0_4] : memref<16x4xf32, #tpu.memory_space<vmem>>, vector<16x4xf32>
    %cst_5 = arith.constant dense<0.000000e+00> : vector<1x4xf32>
    %5 = tpu.matmul %3, %4, %cst_5 {dimension_numbers = #tpu.dot_dimension_numbers<[1], [0], [0], [1], [0, 0, 1, 1], [], []>} : vector<1x16xf32>, vector<16x4xf32>, vector<1x4xf32> -> vector<1x4xf32>
    %c0_6 = arith.constant 0 : index
    %c0_7 = arith.constant 0 : index
    %6 = vector.load %arg3[%c0_6, %c0_7] : memref<1x4xf32, #tpu.memory_space<vmem>>, vector<1x4xf32>
    %7 = arith.addf %5, %6 : vector<1x4xf32>
    %cst_8 = arith.constant 0.000000e+00 : f32
    %8 = vector.broadcast %cst_8 : f32 to vector<1x4xf32>
    %9 = arith.maximumf %7, %8 : vector<1x4xf32>
    %c0_9 = arith.constant 0 : index
    %c0_10 = arith.constant 0 : index
    %10 = vector.load %arg4[%c0_9, %c0_10] : memref<4x16xf32, #tpu.memory_space<vmem>>, vector<4x16xf32>
    %cst_11 = arith.constant dense<0.000000e+00> : vector<1x16xf32>
    %11 = tpu.matmul %9, %10, %cst_11 {dimension_numbers = #tpu.dot_dimension_numbers<[1], [0], [0], [1], [0, 0, 1, 1], [], []>} : vector<1x4xf32>, vector<4x16xf32>, vector<1x16xf32> -> vector<1x16xf32>
    %c0_12 = arith.constant 0 : index
    %c0_13 = arith.constant 0 : index
    %12 = vector.load %arg5[%c0_12, %c0_13] : memref<1x16xf32, #tpu.memory_space<vmem>>, vector<1x16xf32>
    %13 = arith.addf %11, %12 : vector<1x16xf32>
    %14 = arith.negf %13 : vector<1x16xf32>
    %15 = math.exp %14 : vector<1x16xf32>
    %cst_14 = arith.constant 1.000000e+00 : f32
    %16 = vector.broadcast %cst_14 : f32 to vector<1x16xf32>
    %17 = arith.addf %16, %15 : vector<1x16xf32>
    %18 = arith.divf %16, %17 : vector<1x16xf32>
    %19 = vector.shape_cast %18 : vector<1x16xf32> to vector<1x16x1xf32>
    %c0_15 = arith.constant 0 : index
    %c0_16 = arith.constant 0 : index
    %c0_17 = arith.constant 0 : index
    %20 = vector.load %arg1[%c0_15, %c0_16, %c0_17] : memref<1x16x256xf32, #tpu.memory_space<vmem>>, vector<1x16x256xf32>
    %21 = vector.broadcast %19 : vector<1x16x1xf32> to vector<1x16x256xf32>
    %22 = arith.mulf %21, %20 : vector<1x16x256xf32>
    %c0_18 = arith.constant 0 : index
    %c0_19 = arith.constant 0 : index
    %c0_20 = arith.constant 0 : index
    %23 = vector.load %arg6[%c0_18, %c0_19, %c0_20] : memref<1x16x256xf32, #tpu.memory_space<vmem>>, vector<1x16x256xf32>
    tpu.vector_store %arg6[%c0_18, %c0_19, %c0_20], %22 {strides = array<i32>} : memref<1x16x256xf32, #tpu.memory_space<vmem>>, vector<1x16x256xf32>,
    return
  }
  func.func @transform_0(%arg0: i32) -> (i32, i32, i32) {
    %c0_i32 = arith.constant 0 : i32
    %c0_i32_0 = arith.constant 0 : i32
    %c0_i32_1 = arith.constant 0 : i32
    return %arg0, %c0_i32, %c0_i32_0 : i32, i32, i32
  }
  func.func @transform_1(%arg0: i32) -> (i32, i32) {
    %c0_i32 = arith.constant 0 : i32
    %c0_i32_0 = arith.constant 0 : i32
    %c0_i32_1 = arith.constant 0 : i32
    return %c0_i32, %c0_i32_0 : i32, i32
  }
  func.func @transform_2(%arg0: i32) -> (i32, i32) {
    %c0_i32 = arith.constant 0 : i32
    %c0_i32_0 = arith.constant 0 : i32
    %c0_i32_1 = arith.constant 0 : i32
    return %c0_i32, %c0_i32_0 : i32, i32
  }
  func.func @transform_3(%arg0: i32) -> (i32, i32) {
    %c0_i32 = arith.constant 0 : i32
    %c0_i32_0 = arith.constant 0 : i32
    %c0_i32_1 = arith.constant 0 : i32
    return %c0_i32, %c0_i32_0 : i32, i32
  }
  func.func @transform_4(%arg0: i32) -> (i32, i32) {
    %c0_i32 = arith.constant 0 : i32
    %c0_i32_0 = arith.constant 0 : i32
    %c0_i32_1 = arith.constant 0 : i32
    return %c0_i32, %c0_i32_0 : i32, i32
  }
  func.func @transform_5(%arg0: i32) -> (i32, i32, i32) {
    %c0_i32 = arith.constant 0 : i32
    %c0_i32_0 = arith.constant 0 : i32
    %c0_i32_1 = arith.constant 0 : i32
    return %arg0, %c0_i32, %c0_i32_0 : i32, i32, i32
  }
}

</mosaic_0001>

<bundles_post_ra>
// kernel: tpu_custom_call.1
= control target key start
LH: loop header
LB: loop body
LE: loop exit
PB: predicated region body
PF: predicated region fallthrough
CT: control target
= control target key end

     0   :  { %10 = vsyncpa [#allocation3], 0  ;;  %s962_s0 = inlined_call_operand.hbm [shape: f32[2,16,256], index: 0, kind: input, shape index: {}]   ;;  %s963_s1 = inlined_call_operand.vmem [shape: f32[16,4], index: 1, kind: input, shape index: {}]   ;;  %s964_s2 = inlined_call_operand.vmem [shape: f32[1,4], index: 2, kind: input, shape index: {}]   ;;  %s965_s3 = inlined_call_operand.vmem [shape: f32[4,16], index: 3, kind: input, shape index: {}]   ;;  %s966_s4 = inlined_call_operand.vmem [shape: f32[1,16], index: 4, kind: input, shape index: {}]   ;;  %s967_s5 = inlined_call_operand.hbm [shape: f32[2,16,256], index: 5, kind: output, shape index: {}]  }
   0x1   :  { %12 = vsyncpa [#allocation3 + $0x1], 0 }
   0x2   :  { %13 = vsyncpa [#allocation4], 0 }
   0x3   :  { %15 = vsyncpa [#allocation4 + $0x1], 0  ;;  %s773_s18 = smov 0   ;;  %s775_s19 = smov 0  }
   0x4   :  { %s777_s20 = smov 0   ;;  %s779_s21 = smov 0  }
   0x5 LB: > { %s794_s22 = sadd.s32 4294967295, %s732_s21   ;;  %s539_s23 = sadd.s32 4294967294, %s732_s21   ;;  %s732_s21 = sphi %s779_s21, %s980_s21   ;;  %s728_s20 = sphi %s777_s20, %s979_s20   ;;  %s724_s19 = sphi %s775_s19, %s978_s19   ;;  %s720_s18 = sphi %s773_s18, %s977_s18  }
   0x6   : > { %s798_s24 = sadd.s32 1, %s732_s21   ;;  %s28_s25 = sadd.s32 1, %s728_s20 }
   0x7   : > { %s25_s26 = ssub.s32 %s732_s21, %s798_s24  ;;  %p35_p0 = scmp.ne.s32.totalorder %s728_s20, %s724_s19 }
   0x8   : > { %p26_p1 = scmp.eq.s32.totalorder %s25_s26, 0  ;;  %p36_p2 = scmp.eq.s32.totalorder %s732_s21, 0 }
   0x9   : > { %p41_p3 = scmp.ne.s32.totalorder %s724_s19, %s720_s18  ;;  %p42_p4 = scmp.eq.s32.totalorder %s794_s22, 0 }
   0xa   : > { %s810_s27 = scalar_select %p26_p1, %s728_s20, %s28_s25  }
   0xb   : > { %p812_p5 = por %p36_p2, %p35_p0  ;;  %p816_p6 = por %p42_p4, %p41_p3 }
   0xc   : > { %p149_p7 = scmp.eq.s32.totalorder %s794_s22, 1  ;;  %p155_p8 = scmp.eq.s32.totalorder %s539_s23, 1 }
   0xd   : > { %p591_p10 = scmp.lt.s32.totalorder %s732_s21, 2  ;;  %s187_s7 = sand.u32 1, %s728_s20  }
   0xe   : > { %p823_p11 = por %p149_p7, %p35_p0  ;;  %p827_p12 = por %p155_p8, %p41_p3 }
   0xf   : > { %s557_s8 = sshll.u32 %s732_s21, 9  ;;  %s542_s9 = sshll.u32 %s187_s7, 5 }
  0x10   : > { %s971_s30 = scalar_select %p823_p11, 1, 0 }
  0x11   : > { %s972_s6 = scalar_select %p827_p12, 1, 0 }
  0x12   : > { %s836_s12 = scalar_lea.hbm %s962_s0, %s557_s8  ;;  %s191_s13 = scalar_lea.vmem [#allocation2], %s542_s9 }
  0x13   : > { %s198_s14 = sshll.u32 %s191_s13, 4  ;;  %p840_p13 = pnand %p591_p10, %p812_p5  ;;  %s844_s14 = int_to_ptr.vmem [resolvable:$true] %s198_s14 }
  0x14   : > { %s846_s16 = scalar_lea.sflag [#allocation3], %s187_s7  ;;  %s636_s17 = scalar_lea.hbm %s836_s12, 512 }
  0x15   : > { %p637_p0 = scmp.ne.s32.totalorder %s836_s12, %s636_s17  ;;  %p638_p1 = pneg %p840_p13 }
  0x16   : > { %s641_s26 = scalar_lea.hbm %s962_s0, 1024  ;;  %p642_p4 = scmp.lt.u32.totalorder %s836_s12, %s962_s0 }
  0x17   : > { %p639_p2 = pnand %p638_p1, %p637_p0  ;;  %p643_p5 = scmp.lt.u32.totalorder %s641_s26, %s636_s17 }
  0x18   : > { %p645_p8 = scmp.lt.u32.totalorder %s636_s17, %s836_s12 }
  0x19   : > { %p640_p3 = pneg %p639_p2  ;;  %p644_p7 = por %p643_p5, %p642_p4 }
  0x1b   : > { %p646_p10 = por %p645_p8, %p644_p7 }
  0x1d   : > { %p647_p9 = pnand %p646_p10, %p640_p3 }
  0x1f   : > { %650 = shalt.err (!%p647_p9)
}
  0x20   : > { %s651_s7 = scalar_lea.vmem %s844_s14, 512  ;;  %s734_s9 = smov [#allocation2]  }
  0x21   : > { %p652_p0 = scmp.ne.s32.totalorder %s844_s14, %s651_s7  ;;  %s656_s10 = sshll.u32 %s734_s9, 4  ;;  %s657_s10 = int_to_ptr.vmem [resolvable:$false] %s656_s10 }
  0x22   : > { %s658_s11 = scalar_lea.vmem %s657_s10, 1024  ;;  %p659_p11 = scmp.lt.s32.totalorder %s844_s14, %s657_s10 }
  0x23   : > { %p654_p2 = pnand %p652_p0, %p638_p1  ;;  %p660_p4 = scmp.lt.s32.totalorder %s658_s11, %s651_s7 }
  0x25   : > { %p655_p12 = pneg %p654_p2  ;;  %p661_p5 = por %p660_p4, %p659_p11 }
  0x27   : > { %p662_p7 = pnand %p661_p5, %p655_p12 }
  0x29   : > { %665 = shalt.err (!%p662_p7)
}
  0x2a   : > { %s735_s13 = smov 256   ;;  %s736_s17 = smov 16  }
  0x2b   : > { %586 = dma.hbm_to_vmem [thread:$0]  (!%p840_p13), %s836_s12, 512, %s844_s14, %s846_s16, %s735_s13, %s735_s13, %s736_s17  }
  0x2c   : > { %p545_p9 = scmp.ge.s32.totalorder %s732_s21, 1  ;;  %p206_p1 = scmp.lt.s32.totalorder %s732_s21, 3 }
  0x2e   : > { %p207_p3 = pnand %p545_p9, %p206_p1 }
  0x2f   : > { %s877_s23 = sand.u32 (!%p207_p3), 1, %s724_s19  }
  0x30   : > { %210 = sbr.rel (%p207_p3) target bundleno = 804 (0x324), region = 40  ;;  %s546_s25 = sshll.u32 (!%p207_p3), %s877_s23, 5 }
  0x31   : > { %s213_s26 = scalar_lea.sflag (!%p207_p3), [#allocation3], %s877_s23  ;;  %s216_s28 = scalar_lea.vmem (!%p207_p3), [#allocation2], %s546_s25 }
  0x37   : > { %711 = dma.done.wait (%p816_p6), %s213_s26, 512  }
  0x38   : > { %713 = vsyncadd (%p816_p6), %s213_s26, 4294966784  ;;  %v243_v0 = vld [vmem:[%s216_s28] sm:$0xff]  ;;  %v244_v1 = vld [vmem:[%s216_s28 + $0x8] sm:$0xff]  ;;  %v737_v9 = vmov 0.0|0.0   ;;  %vm738_vm0 = vmmov 0   ;;  %v739_v10 = vmov 0.0   ;;  %v260_v11 = vlaneseq }
  0x39   : > { %v887_v2 = vld [vmem:[%s216_s28 + $0x10] sm:$0xff]  ;;  %v247_v3 = vadd.f32 %v244_v1, %v243_v0  ;;  %v889_v4 = vld [vmem:[%s216_s28 + $0x18] sm:$0xff]  ;;  %v255_v6 = vld [vmem:[%s963_s1] sm:$0xff]  ;;  %576 = vmatprep.subr.bf16.mxu0 %v737_v9  ;;  %568 = vmatprep.mubr.msk.f32.mxu0 %vm738_vm0, %v739_v10  ;;  %vm271_vm1 = vcmask 130112   ;;  %vm273_vm2 = vcmask 130048   ;;  %vm353_vm3 = vcmask 1043456  }
  0x3a   : > { %v250_v5 = vadd.f32 %v889_v4, %v887_v2  ;;  %v256_v7 = vld [vmem:[%s963_s1 + $0x8] sm:$0xff]  ;;  %571 = vmatprep.subr.mxu1 %v739_v10  ;;  %573 = vmatprep.mubr.msk.f32.mxu1 %vm738_vm0, %v739_v10  ;;  %v261_v12 = vand.u32 127, %v260_v11  ;;  %v263_v13 = vshrl.u32 %v260_v11, 7  ;;  %v347_v24 = vld [vmem:[%s965_s3] sm:$0xf]  ;;  %vm349_vm4 = vcmask 31744  }
  0x3b   : > { %248 = vadd.xlane.f32.xlu0 %v247_v3  ;;  %v577_v8 = vpack.c.bf16 %v256_v7, %v255_v6  ;;  %572 = vmatpush3.msk.msra.mxu1 %vm353_vm3, %v347_v24  ;;  %v257_v25 = vld [vmem:[%s964_s2] sm:$0x1]  ;;  %s242_s13 = scalar_lea.vmem [#allocation5], %s546_s25  ;;  %s558_s26 = sshll.u32 %s794_s22, 9 }
  0x3c   : > { %v266_v14 = vadd.s32 4294967288, %v261_v12  ;;  %v264_v16 = vsub.s32 %v261_v12, %v263_v13  ;;  %v348_v30 = vld [vmem:[%s966_s4] sm:$0x1]  ;;  %v435_v37 = vsub.s32 0, %v263_v13  ;;  %s466_s17 = sshll.u32 %s242_s13, 4  ;;  %s916_s14 = scalar_lea.hbm %s967_s5, %s558_s26  ;;  %s911_s17 = int_to_ptr.vmem [resolvable:$true] %s466_s17 }
  0x3d   : > { %578 = vmatpush3.bf16.msra.mxu0 %v577_v8  ;;  %s453_s22 = scalar_lea.sflag [#allocation4], %s877_s23  ;;  %s666_s25 = scalar_lea.vmem %s911_s17, 512 }
  0x3e   : > { %v269_v18 = vsub.s32 %v266_v14, %v263_v13  ;;  %p667_p6 = scmp.ne.s32.totalorder %s911_s17, %s666_s25  ;;  %p974_p11 = scmp.ne.s32.totalorder %s971_s30, 0 }
  0x3f   : > { %251 = vadd.xlane.f32.xlu0 %v250_v5  ;;  %s740_s15 = smov [#allocation5]  }
  0x40   : > { %p668_p12 = pnand %p667_p6, %p974_p11  ;;  %s670_s16 = sshll.u32 %s740_s15, 4  ;;  %s671_s16 = int_to_ptr.vmem [resolvable:$false] %s670_s16 }
  0x41   : > { %s672_s29 = scalar_lea.vmem %s671_s16, 1024  ;;  %p673_p8 = scmp.lt.s32.totalorder %s911_s17, %s671_s16 }
  0x42   : > { %p669_p13 = pneg %p668_p12  ;;  %p674_p10 = scmp.lt.s32.totalorder %s672_s29, %s666_s25 }
  0x44   : > { %p675_p0 = por %p674_p10, %p673_p8 }
  0x46   : > { %p676_p2 = pnand %p675_p0, %p669_p13 }
  0xc8   : > { %v249_v15 = vpop.xlane.xlu0 %248 }
  0xc9   : > { %v253_v17 = vmul.f32 0.00390625, %v249_v15 }
  0xcb   : > { %v265_v21 = vrot.slane %v253_v17, %v264_v16 }
  0xcc   : > { %v252_v19 = vpop.xlane.xlu0 %251 }
  0xcd   : > { %v254_v20 = vmul.f32 0.00390625, %v252_v19 }
  0xcf   : > { %v270_v22 = vrot.slane %v254_v20, %v269_v18 }
  0xd1   : > { %v272_v23 = vsel %vm271_vm1, %v270_v22, %v265_v21 }
  0xd2   : > { %569 = vmatmul.mubr.msk.f32.vlgmr.msra.gmra.mrb[0].mxu0 %vm273_vm2, %v272_v23 }
 0x1a5   : > { %v342_v26 = vpop.f32.mrb[0].mxu0 }
 0x1a6   : > { %v343_v27 = vadd.f32 %v342_v26, %v257_v25  ;;  %v570_v28 = vpop.f32.mrb[1].mxu0 }
 0x1a8   : > { %v346_v29 = vmax.f32 %v343_v27, 0.0 }
 0x1aa   : > { %574 = vmatmul.mubr.msk.f32.vlgmr.msra.gmra.mrb[0].mxu1 %vm349_vm4, %v346_v29 }
 0x27d   : > { %v423_v31 = vpop.f32.mrb[0].mxu1 }
 0x27e   : > { %v424_v32 = vadd.f32 %v423_v31, %v348_v30  ;;  %v575_v33 = vpop.f32.mrb[1].mxu1 }
 0x280   : > { %v551_v34 = vmul.f32 -1.442695, %v424_v32 }
 0x282   : > { %632 = vpow2.f32 %v551_v34 }
 0x28c   : > { %v633_v35 = vpop.eup %632 }
 0x28d   : > { %v430_v36 = vadd.f32 1.0, %v633_v35 }
 0x28f   : > { %634 = vrcp.f32 %v430_v36 }
 0x299   : > { %v635_v38 = vpop.eup %634 }
 0x29a   : > { %v436_v39 = vrot.slane %v635_v38, %v435_v37 }
 0x29c   : > { %438 = vbcast.lane.b32.xlu1 %v436_v39, 256 }
 0x2a0   : > { %442 = vbcast.lane.b32.xlu1 %v436_v39, 264 }
 0x30e   : > { %v439_v40 = vpop.permute.xlu1 %438 }
 0x30f   : > { %v444_v41 = vmul.f32 %v439_v40, %v243_v0  ;;  %v445_v42 = vmul.f32 %v439_v40, %v244_v1 }
 0x311   : > { %448 = vst [vmem:[%s242_s13] sm:$0xff] %v444_v41  ;;  %449 = vst [vmem:[%s242_s13 + $0x8] sm:$0xff] %v445_v42 }
 0x312   : > { %v443_v43 = vpop.permute.xlu1 %442 }
 0x313   : > { %v446_v44 = vmul.f32 %v443_v43, %v887_v2  ;;  %v447_v45 = vmul.f32 %v443_v43, %v889_v4 }
 0x315   : > { %450 = vst [vmem:[%s242_s13 + $0x10] sm:$0xff] %v446_v44  ;;  %451 = vst [vmem:[%s242_s13 + $0x18] sm:$0xff] %v447_v45 }
 0x316   : > { %679 = shalt.err (!%p676_p2)
}
 0x317   : > { %s680_s8 = scalar_lea.hbm %s916_s14, 512  ;;  %s684_s10 = scalar_lea.hbm %s967_s5, 1024 }
 0x318   : > { %p681_p4 = scmp.ne.s32.totalorder %s916_s14, %s680_s8  ;;  %p685_p9 = scmp.lt.u32.totalorder %s916_s14, %s967_s5 }
 0x319   : > { %p686_p1 = scmp.lt.u32.totalorder %s684_s10, %s680_s8  ;;  %p688_p6 = scmp.lt.u32.totalorder %s680_s8, %s916_s14 }
 0x31a   : > { %p682_p5 = pnand %p681_p4, %p974_p11 }
 0x31b   : > { %p687_p3 = por %p686_p1, %p685_p9 }
 0x31c   : > { %p683_p7 = pneg %p682_p5 }
 0x31d   : > { %p689_p12 = por %p688_p6, %p687_p3 }
 0x31f   : > { %p690_p13 = pnand %p689_p12, %p683_p7 }
 0x321   : > { %693 = shalt.err (!%p690_p13)
}
 0x322   : > { %s741_s26 = smov 256   ;;  %s742_s28 = smov 16  }
 0x323   : > { %581 = dma.vmem_to_hbm [thread:$0]  (%p974_p11), %s911_s17, 512, %s916_s14, %s453_s22, %s741_s26, %s741_s26, %s742_s28  }
 0x324 PF: > { %s481_s12 = sand.u32 1, %s720_s18   ;;  %p975_p8 = scmp.ne.s32.totalorder %s972_s6, 0 }
 0x325   : > { %p976_p10 = scmp.ge.s32.totalorder %s732_s21, 2  ;;  %s482_s25 = scalar_lea.sflag [#allocation4], %s481_s12 }
 0x327   : > { %p588_p0 = pnand %p976_p10, %p975_p8 }
 0x329   : > { %715 = dma.done.wait (!%p588_p0), %s482_s25, 512  }
 0x32a   : > { %717 = vsyncadd (!%p588_p0), %s482_s25, 4294966784  ;;  %p18_p2 = scmp.ge.s32.totalorder %s798_s24, 4   ;;  %s977_s18 = smov %s724_s19 }
 0x32b   : > { %s978_s19 = smov %s728_s20  ;;  %s979_s20 = smov %s810_s27 }
 0x32c   : > { %s980_s21 = smov %s798_s24  ;;  %20 = sbr.rel (!%p18_p2) target bundleno = 5 (0x5), region = 85 }
 0x333   :  { %487 = vsyncpa [#allocation3], 1 }
 0x334   :  { %489 = vsyncpa [#allocation3 + $0x1], 1 }
 0x335   :  { %490 = vsyncpa [#allocation4], 1 }
 0x336   :  { %492 = vsyncpa [#allocation4 + $0x1], 1 }

</bundles_post_ra>
